<compile_context>
chip_gen: v7x
topology: tpu7x:2x2x1
jax: 0.10.0
libtpu: 0.0.40
codegen_flags: <defaults>
</compile_context>

<pallas_src>
import functools

import jax
import jax.numpy as jnp
from jax.experimental import pallas as pl
from jax.experimental.pallas import tpu as pltpu


# Conservative VMEM budget for the per-step working set: safe on v7x (64 MiB
# VMEM / TC, 32 MiB scoped default); v5e/v6e (128 MiB physical) can raise it.
_DEFAULT_VMEM_BUDGET = 40 * 1024 * 1024
_SCOPED_VMEM_DEFAULT = 16 * 1024 * 1024   # only override the scoped limit when needed


def _pick_class_block(n_cls, cb_max):
    """Largest divisor of n_cls <= cb_max (capped at 128 classes / step).

    Prefers an even number of class blocks (v7x has 2 TensorCores sharing the
    "parallel" grid axis) as long as that shrinks the block by at most 2x.
    A divisor is used so no ragged tail block ever reads/writes out of range.
    """
    cb_max = max(1, min(cb_max, 128, n_cls))
    best = 1
    for cb in range(cb_max, 0, -1):
        if n_cls % cb == 0:
            best = cb
            break
    for cb in range(best, 0, -1):
        if n_cls % cb == 0 and (n_cls // cb) % 2 == 0 and cb * 2 >= best:
            return cb
    return best


def _compiler_params(vmem_needed_bytes):
    vmem_limit = None
    if vmem_needed_bytes > _SCOPED_VMEM_DEFAULT:
        # Raise the scoped VMEM limit only when the tiles actually need it
        # (kept <= 48 MiB so the same code path is safe on v7x's 64 MiB VMEM).
        vmem_limit = min(int(1.25 * vmem_needed_bytes), 48 * 1024 * 1024)
    return pltpu.CompilerParams(
        dimension_semantics=("parallel",),   # class-block axis -> both TCs on v7x
        vmem_limit_bytes=vmem_limit)


# --------------------------------------------------------------------------
# Kernel 1: full concat, CB classes per grid step.
# --------------------------------------------------------------------------
def _prompt_concat_kernel(prefix_ref, ctx_ref, suffix_ref, out_ref, *, n_ctx):
    """Assemble CB classes' prompts: [SOS | ctx | class-name/EOS/pad]."""
    cb = out_ref.shape[0]
    dim = out_ref.shape[-1]
    if len(ctx_ref.shape) == 2:
        # Generic context: one (0,0) block fetched once; broadcast over the
        # class block with a single wide op (hoisted, no in-kernel loop).
        ctx = jnp.broadcast_to(ctx_ref[...][None, :, :], (cb, n_ctx, dim))
    else:
        # Class-specific context (CSC).
        ctx = ctx_ref[...]
    # Single full-tile store: compiler emits mostly unmasked full-vreg vst
    # instead of three sublane-misaligned partial stores.  Explicit casts keep
    # the mixed-precision (fp32 ctx -> bf16/fp16 prompts) path well defined.
    out_ref[...] = jnp.concatenate(
        [prefix_ref[...].astype(out_ref.dtype),
         ctx.astype(out_ref.dtype),
         suffix_ref[...].astype(out_ref.dtype)],
        axis=1)


def prompt_learner_forward(ctx, token_prefix, token_suffix, *, class_block=None,
                           vmem_budget_bytes=_DEFAULT_VMEM_BUDGET):
    """PromptLearner.forward() for position == 'end' (builds the full tensor).

    ctx:          (n_ctx, D) or (n_cls, n_ctx, D)
    token_prefix: (n_cls, 1, D)
    token_suffix: (n_cls, L-1-n_ctx, D)
    returns:      (n_cls, L, D)
    """
    n_cls, _, dim = token_prefix.shape
    n_suf = token_suffix.shape[1]
    csc = ctx.ndim == 3
    n_ctx = ctx.shape[1] if csc else ctx.shape[0]
    seq_len = 1 + n_ctx + n_suf
    out_dtype = token_prefix.dtype
    out_sz = jnp.dtype(out_dtype).itemsize
    ctx_sz = jnp.dtype(ctx.dtype).itemsize

    # Per-class VMEM working set: double-buffered inputs, double-buffered
    # output tile, plus the concatenated temp tile.
    in_b = dim * (1 + n_suf) * out_sz + (dim * n_ctx * ctx_sz if csc else 0)
    out_b = dim * seq_len * out_sz
    per_class = 2 * in_b + 3 * out_b
    if class_block is None:
        class_block = _pick_class_block(n_cls, vmem_budget_bytes // max(per_class, 1))
    assert n_cls % class_block == 0, "class_block must divide n_cls"
    grid = (n_cls // class_block,)

    if csc:
        ctx_spec = pl.BlockSpec((class_block, n_ctx, dim), lambda i: (i, 0, 0))
    else:
        ctx_spec = pl.BlockSpec((n_ctx, dim), lambda i: (0, 0))

    bytes_accessed = (token_prefix.size * out_sz + token_suffix.size * out_sz
                      + ctx.size * ctx_sz + n_cls * seq_len * dim * out_sz)

    kernel = functools.partial(_prompt_concat_kernel, n_ctx=n_ctx)
    return pl.pallas_call(
        kernel,
        out_shape=jax.ShapeDtypeStruct((n_cls, seq_len, dim), out_dtype),
        grid=grid,
        in_specs=[
            pl.BlockSpec((class_block, 1, dim), lambda i: (i, 0, 0)),      # prefix (SOS)
            ctx_spec,                                                      # learnable ctx
            pl.BlockSpec((class_block, n_suf, dim), lambda i: (i, 0, 0)),  # suffix
        ],
        out_specs=pl.BlockSpec((class_block, seq_len, dim), lambda i: (i, 0, 0)),
        compiler_params=_compiler_params(class_block * per_class),
        cost_estimate=pl.CostEstimate(flops=0, transcendentals=0,
                                      bytes_accessed=int(bytes_accessed)),
    )(token_prefix, ctx, token_suffix)


# --------------------------------------------------------------------------
# Kernel 2: in-place ctx-rows-only update into a persistent prompt buffer.
# --------------------------------------------------------------------------
def _ctx_update_kernel(ctx_ref, tmpl_ref, out_ref, slab_ref, sem_ref, *,
                       class_block, n_ctx):
    """Write only rows [1, 1+n_ctx) of CB classes into the aliased prompt buffer."""
    del tmpl_ref  # same HBM buffer as out_ref (aliased); SOS/suffix rows stay untouched
    i = pl.program_id(0)
    if len(ctx_ref.shape) == 2:
        # Generic ctx: broadcast across the class block.  One cheap vreg-copy
        # slab fill per step (negligible vs the DMA) — done every step so the
        # "parallel" megacore sharding stays correct on v7x.
        slab_ref[...] = jnp.broadcast_to(
            ctx_ref[...][None, :, :], slab_ref.shape).astype(slab_ref.dtype)
    else:
        slab_ref[...] = ctx_ref[...].astype(slab_ref.dtype)
    cls0 = pl.multiple_of(i * class_block, class_block)
    copy = pltpu.make_async_copy(
        slab_ref,
        out_ref.at[pl.ds(cls0, class_block), pl.ds(1, n_ctx), :],
        sem_ref)
    copy.start()
    copy.wait()
    # TODO(synk): double-buffer slab/sem (start step i, wait at step i+1) to hide
    # DMA issue latency once per-step transfers get small.


def prompt_learner_update_ctx(ctx, prompts, *, class_block=None,
                              vmem_budget_bytes=_DEFAULT_VMEM_BUDGET):
    """Steady-state forward: `prompts` already holds the SOS row and the
    class-name/EOS/pad rows (constant across training steps); only rows
    1 : 1+n_ctx are rewritten with the learnable context.

    ctx:     (n_ctx, D) or (n_cls, n_ctx, D)
    prompts: (n_cls, L, D)  -- prefix/suffix rows valid, ctx rows may be stale
    returns: (n_cls, L, D)  -- aliased with `prompts`
    """
    n_cls, seq_len, dim = prompts.shape
    csc = ctx.ndim == 3
    n_ctx = ctx.shape[1] if csc else ctx.shape[0]
    out_dtype = prompts.dtype
    out_sz = jnp.dtype(out_dtype).itemsize
    ctx_sz = jnp.dtype(ctx.dtype).itemsize

    # Per-class VMEM: the DMA slab + (CSC only) the double-buffered ctx block.
    per_class = dim * n_ctx * out_sz + (2 * dim * n_ctx * ctx_sz if csc else 0)
    if class_block is None:
        class_block = _pick_class_block(n_cls, vmem_budget_bytes // max(per_class, 1))
    assert n_cls % class_block == 0, "class_block must divide n_cls"
    grid = (n_cls // class_block,)

    if csc:
        ctx_spec = pl.BlockSpec((class_block, n_ctx, dim), lambda i: (i, 0, 0))
    else:
        ctx_spec = pl.BlockSpec((n_ctx, dim), lambda i: (0, 0))

    bytes_accessed = ctx.size * ctx_sz + n_cls * n_ctx * dim * out_sz
    kernel = functools.partial(_ctx_update_kernel,
                               class_block=class_block, n_ctx=n_ctx)
    return pl.pallas_call(
        kernel,
        out_shape=jax.ShapeDtypeStruct((n_cls, seq_len, dim), out_dtype),
        grid=grid,
        in_specs=[
            ctx_spec,                                # learnable ctx (VMEM, auto-pipelined)
            pl.BlockSpec(memory_space=pl.ANY),       # persistent prompt buffer (raw HBM)
        ],
        out_specs=pl.BlockSpec(memory_space=pl.ANY),  # same buffer; written by manual DMA
        scratch_shapes=[
            pltpu.VMEM((class_block, n_ctx, dim), out_dtype),
            pltpu.SemaphoreType.DMA,
        ],
        input_output_aliases={1: 0},                 # prompts buffer -> output
        compiler_params=_compiler_params(class_block * per_class),
        cost_estimate=pl.CostEstimate(flops=0, transcendentals=0,
                                      bytes_accessed=int(bytes_accessed)),
    )(ctx, prompts)


# TODO(synk): CLASS_TOKEN_POSITION in {'middle', 'front'} needs per-class
# name_lens-dependent dynamic-length splices; not implemented here (the default
# 'end' path above is the one exercised in training).


if __name__ == "__main__":
    # Small synthetic shapes consistent with the module:
    #   n_cls classes, n_ctx context tokens, total token length L, embed dim D.
    n_cls, n_ctx, seq_len, dim = 8, 4, 16, 128
    n_suf = seq_len - 1 - n_ctx
    dtype = jnp.float32

    key = jax.random.PRNGKey(0)
    k_emb, k_ctx, k_csc = jax.random.split(key, 3)

    # Stand-in for clip_model.token_embedding(tokenized_prompts): (n_cls, L, D)
    embedding = jax.random.normal(k_emb, (n_cls, seq_len, dim), dtype=dtype)
    token_prefix = embedding[:, :1, :]              # (n_cls, 1, D)
    token_suffix = embedding[:, 1 + n_ctx:, :]      # (n_cls, L-1-n_ctx, D)

    # nn.init.normal_(ctx_vectors, std=0.02): generic and class-specific contexts.
    ctx = 0.02 * jax.random.normal(k_ctx, (n_ctx, dim), dtype=dtype)
    ctx_csc = 0.02 * jax.random.normal(k_csc, (n_cls, n_ctx, dim), dtype=dtype)

    ctx_b = jnp.broadcast_to(ctx[None, :, :], (n_cls, n_ctx, dim))
    ref_gen = jnp.concatenate([token_prefix, ctx_b, token_suffix], axis=1)
    ref_csc = jnp.concatenate([token_prefix, ctx_csc, token_suffix], axis=1)

    # --- 1) full-concat kernel: generic + class-specific contexts ---
    out = jax.block_until_ready(prompt_learner_forward(ctx, token_prefix, token_suffix))
    assert out.shape == (n_cls, seq_len, dim)
    assert jnp.allclose(out, ref_gen), "generic concat mismatch vs reference"

    out_csc = jax.block_until_ready(
        prompt_learner_forward(ctx_csc, token_prefix, token_suffix))
    assert jnp.allclose(out_csc, ref_csc), "CSC concat mismatch vs reference"

    # Mixed precision: bf16 prompt buffer (typical CLIP), fp32 learnable ctx.
    pre_bf = token_prefix.astype(jnp.bfloat16)
    suf_bf = token_suffix.astype(jnp.bfloat16)
    out_bf = jax.block_until_ready(prompt_learner_forward(ctx, pre_bf, suf_bf))
    ref_bf = jnp.concatenate([pre_bf, ctx_b.astype(jnp.bfloat16), suf_bf], axis=1)
    assert out_bf.dtype == jnp.bfloat16
    assert jnp.allclose(out_bf.astype(jnp.float32), ref_bf.astype(jnp.float32)), \
        "bf16 concat mismatch vs reference"

    # --- 2) in-place ctx-rows-only update into a persistent prompt buffer ---
    def make_template():
        # prefix/suffix rows valid; ctx rows are placeholders to be overwritten.
        return jnp.concatenate(
            [token_prefix, jnp.zeros((n_cls, n_ctx, dim), dtype), token_suffix], axis=1)

    out_inplace = jax.block_until_ready(prompt_learner_update_ctx(ctx, make_template()))
    assert jnp.allclose(out_inplace, ref_gen), "in-place generic mismatch vs reference"

    out_inplace_csc = jax.block_until_ready(
        prompt_learner_update_ctx(ctx_csc, make_template()))
    assert jnp.allclose(out_inplace_csc, ref_csc), "in-place CSC mismatch vs reference"

    print("KERNEL_OK")
</pallas_src>

<mosaic_0001>
module attributes {stable_mosaic.version = 11 : i64} {
  func.func @_prompt_concat_kernel(%arg0: i32, %arg1: memref<4x1x128xf32, #tpu.memory_space<vmem>>, %arg2: memref<4x128xf32, #tpu.memory_space<vmem>>, %arg3: memref<4x11x128xf32, #tpu.memory_space<vmem>>, %arg4: memref<4x16x128xf32, #tpu.memory_space<vmem>>) attributes {dimension_semantics = [#tpu.dimension_semantics<parallel>], iteration_bounds = array<i64: 2>, scalar_prefetch = 0 : i64, scratch_operands = 0 : i64, tpu.core_type = #tpu.core_type<tc>, window_params = [{transform_indices = @transform_0, window_bounds = array<i64: 4, 1, 128>}, {pipeline_mode = #tpu.pipeline_mode<synchronous>, transform_indices = @transform_1, window_bounds = array<i64: 4, 128>}, {transform_indices = @transform_2, window_bounds = array<i64: 4, 11, 128>}, {transform_indices = @transform_3, window_bounds = array<i64: 4, 16, 128>}]} {
    %c0 = arith.constant 0 : index
    %c0_0 = arith.constant 0 : index
    %0 = vector.load %arg2[%c0, %c0_0] : memref<4x128xf32, #tpu.memory_space<vmem>>, vector<4x128xf32>
    %1 = vector.shape_cast %0 : vector<4x128xf32> to vector<1x4x128xf32>
    %2 = vector.shape_cast %1 : vector<1x4x128xf32> to vector<1x4x128xf32>
    %3 = vector.broadcast %2 : vector<1x4x128xf32> to vector<4x4x128xf32>
    %c0_1 = arith.constant 0 : index
    %c0_2 = arith.constant 0 : index
    %c0_3 = arith.constant 0 : index
    %4 = vector.load %arg1[%c0_1, %c0_2, %c0_3] : memref<4x1x128xf32, #tpu.memory_space<vmem>>, vector<4x1x128xf32>
    %c0_4 = arith.constant 0 : index
    %c0_5 = arith.constant 0 : index
    %c0_6 = arith.constant 0 : index
    %5 = vector.load %arg3[%c0_4, %c0_5, %c0_6] : memref<4x11x128xf32, #tpu.memory_space<vmem>>, vector<4x11x128xf32>
    %6 = tpu.concatenate %4, %3, %5 in 1 : vector<4x1x128xf32>, vector<4x4x128xf32>, vector<4x11x128xf32> -> vector<4x16x128xf32>
    %c0_7 = arith.constant 0 : index
    %c0_8 = arith.constant 0 : index
    %c0_9 = arith.constant 0 : index
    %7 = vector.load %arg4[%c0_7, %c0_8, %c0_9] : memref<4x16x128xf32, #tpu.memory_space<vmem>>, vector<4x16x128xf32>
    tpu.vector_store %arg4[%c0_7, %c0_8, %c0_9], %6 {strides = array<i32>} : memref<4x16x128xf32, #tpu.memory_space<vmem>>, vector<4x16x128xf32>,
    return
  }
  func.func @transform_0(%arg0: i32) -> (i32, i32, i32) {
    %c0_i32 = arith.constant 0 : i32
    %c0_i32_0 = arith.constant 0 : i32
    %c0_i32_1 = arith.constant 0 : i32
    return %arg0, %c0_i32, %c0_i32_0 : i32, i32, i32
  }
  func.func @transform_1(%arg0: i32) -> (i32, i32) {
    %c0_i32 = arith.constant 0 : i32
    %c0_i32_0 = arith.constant 0 : i32
    %c0_i32_1 = arith.constant 0 : i32
    return %c0_i32, %c0_i32_0 : i32, i32
  }
  func.func @transform_2(%arg0: i32) -> (i32, i32, i32) {
    %c0_i32 = arith.constant 0 : i32
    %c0_i32_0 = arith.constant 0 : i32
    %c0_i32_1 = arith.constant 0 : i32
    return %arg0, %c0_i32, %c0_i32_0 : i32, i32, i32
  }
  func.func @transform_3(%arg0: i32) -> (i32, i32, i32) {
    %c0_i32 = arith.constant 0 : i32
    %c0_i32_0 = arith.constant 0 : i32
    %c0_i32_1 = arith.constant 0 : i32
    return %arg0, %c0_i32, %c0_i32_0 : i32, i32, i32
  }
}

</mosaic_0001>

<bundles_post_ra>
// kernel: tpu_custom_call.1
= control target key start
LH: loop header
LB: loop body
LE: loop exit
PB: predicated region body
PF: predicated region fallthrough
CT: control target
= control target key end

     0   :  { %8 = vsyncpa [#allocation3], 0  ;;  %s625_s0 = inlined_call_operand.vmem [shape: f32[8,1,128], index: 0, kind: input, shape index: {}]   ;;  %s626_s1 = inlined_call_operand.vmem [shape: f32[4,128], index: 1, kind: input, shape index: {}]   ;;  %s627_s2 = inlined_call_operand.vmem [shape: f32[8,11,128], index: 2, kind: input, shape index: {}]   ;;  %s628_s3 = inlined_call_operand.hbm [shape: f32[8,16,128], index: 3, kind: output, shape index: {}]  }
   0x1   :  { %10 = vsyncpa [#allocation3 + $0x1], 0  ;;  %s488_s12 = smov 0   ;;  %s490_s13 = smov 0  }
   0x2   :  { %s492_s14 = smov 0   ;;  %s494_s15 = smov 0  }
   0x3 LB: > { %s509_s16 = sadd.s32 4294967295, %s463_s15   ;;  %s342_s17 = sadd.s32 4294967294, %s463_s15   ;;  %s463_s15 = sphi %s494_s15, %s634_s15   ;;  %s459_s14 = sphi %s492_s14, %s633_s14   ;;  %s455_s13 = sphi %s490_s13, %s632_s13   ;;  %s451_s12 = sphi %s488_s12, %s631_s12  }
   0x4   : > { %s513_s18 = sadd.s32 1, %s463_s15   ;;  %s96_s19 = sadd.s32 1, %s459_s14 }
   0x5   : > { %s93_s20 = ssub.s32 %s463_s15, %s513_s18  ;;  %p106_p0 = scmp.ne.s32.totalorder %s459_s14, %s455_s13 }
   0x6   : > { %p94_p1 = scmp.eq.s32.totalorder %s93_s20, 0  ;;  %p107_p2 = scmp.eq.s32.totalorder %s509_s16, 1 }
   0x7   : > { %p112_p3 = scmp.ne.s32.totalorder %s455_s13, %s451_s12  ;;  %p113_p4 = scmp.eq.s32.totalorder %s342_s17, 1 }
   0x8   : > { %s524_s21 = scalar_select %p94_p1, %s459_s14, %s96_s19  }
   0x9   : > { %p526_p5 = por %p107_p2, %p106_p0  ;;  %p530_p6 = por %p113_p4, %p112_p3 }
   0xa   : > { %p345_p7 = scmp.ge.s32.totalorder %s463_s15, 1  ;;  %p152_p8 = scmp.lt.s32.totalorder %s463_s15, 3 }
   0xc   : > { %p153_p9 = pnand %p345_p7, %p152_p8 }
   0xd   : > { %s178_s24 = sand.u32 (!%p153_p9), 1, %s455_s13   ;;  %s347_s25 = sshll.u32 (!%p153_p9), %s509_s16, 2  ;;  %v194_v0 = vld [vmem:[%s626_s1] sm:$0xf] (!%p153_p9)  ;;  %vm239_vm0 = vcmask (!%p153_p9), 1040384   ;;  %vm218_vm1 = vcmask (!%p153_p9), 1044480  }
   0xe   : > { %156 = sbr.rel (%p153_p9) target bundleno = 47 (0x2f), region = 32  ;;  %s346_s28 = sshll.u32 (!%p153_p9), %s178_s24, 6  ;;  %v208_v1 = vrot.slane (!%p153_p9), %v194_v0, 7 }
   0xf   : > { %p182_p10 = scmp.lt.s32.totalorder (!%p153_p9), %s347_s25, 7  ;;  %s550_s9 = scalar_lea.vmem (!%p153_p9), [#allocation2], %s346_s28 }
  0x10   : > { %s271_s10 = sshll.u32 (!%p153_p9), %s550_s9, 4  ;;  %s359_s11 = sshll.u32 (!%p153_p9), %s509_s16, 10  ;;  %s565_s10 = int_to_ptr.vmem [resolvable:$true] %s271_s10 }
  0x11   : > { %s575_s20 = scalar_lea.hbm (!%p153_p9), %s628_s3, %s359_s11  ;;  %s401_s26 = scalar_lea.vmem (!%p153_p9), %s565_s10, 1024 }
  0x12   : > { %p402_p11 = scmp.ne.s32.totalorder (!%p153_p9), %s565_s10, %s401_s26  ;;  %s465_s16 = smov (!%p153_p9), [#allocation2]  }
  0x13   : > { %s405_s27 = sshll.u32 (!%p153_p9), %s465_s16, 4  ;;  %s406_s27 = int_to_ptr.vmem [resolvable:$false] %s405_s27 }
  0x14   : > { %p403_p12 = pnand (!%p153_p9), %p402_p11, %p526_p5  ;;  %s407_s28 = scalar_lea.vmem (!%p153_p9), %s406_s27, 2048 }
  0x15   : > { %s636_s25 = smov (!%p182_p10, %s347_s25), 7  ;;  %p408_p0 = scmp.lt.s32.totalorder %s565_s10, %s406_s27 }
  0x16   : > { %s184_s4 = scalar_lea.vmem %s625_s0, %s636_s25  ;;  %s357_s5 = sshll.u32 %s636_s25, 4 }
  0x17   : > { %s191_s8 = scalar_lea.vmem %s627_s2, %s357_s5  ;;  %v195_v2 = vld [vmem:[%s184_s4] sm:$0x1]  ;;  %v196_v3 = vld [vmem:[%s184_s4 + $0x1] sm:$0x1]  ;;  %v197_v4 = vld [vmem:[%s184_s4 + $0x2] sm:$0x1]  ;;  %p404_p13 = pneg %p403_p12 }
  0x18   : > { %v199_v5 = vld [vmem:[%s191_s8] sm:$0xff]  ;;  %v240_v6 = vsel %vm239_vm0, %v195_v2, %v208_v1  ;;  %v200_v7 = vld [vmem:[%s191_s8 + $0x8] sm:$0x7]  ;;  %v201_v8 = vld [vmem:[%s191_s8 + $0x10] sm:$0xff]  ;;  %v241_v9 = vsel %vm239_vm0, %v196_v3, %v208_v1  ;;  %v242_v15 = vsel %vm239_vm0, %v197_v4, %v208_v1  ;;  %s584_s25 = scalar_lea.sflag [#allocation3], %s178_s24  ;;  %p409_p1 = scmp.lt.s32.totalorder %s407_s28, %s401_s26 }
  0x19   : > { %v219_v10 = vrot.slane %v199_v5, 3  ;;  %v220_v11 = vrot.slane %v200_v7, 3  ;;  %v222_v12 = vrot.slane %v201_v8, 3  ;;  %v202_v13 = vld [vmem:[%s191_s8 + $0x18] sm:$0x7]  ;;  %v203_v14 = vld [vmem:[%s191_s8 + $0x20] sm:$0xff] }
  0x1a   : > { %v223_v16 = vrot.slane %v202_v13, 3  ;;  %v225_v17 = vrot.slane %v203_v14, 3  ;;  %v204_v18 = vld [vmem:[%s191_s8 + $0x28] sm:$0x7]  ;;  %v198_v19 = vld [vmem:[%s184_s4 + $0x3] sm:$0x1]  ;;  %p410_p2 = por %p409_p1, %p408_p0 }
  0x1b   : > { %v244_v20 = vsel %vm218_vm1, %v240_v6, %v219_v10  ;;  %v221_v21 = vsel %vm218_vm1, %v219_v10, %v220_v11  ;;  %v245_v22 = vsel %vm218_vm1, %v241_v9, %v222_v12  ;;  %v226_v23 = vrot.slane %v204_v18, 3  ;;  %v205_v24 = vld [vmem:[%s191_s8 + $0x30] sm:$0xff]  ;;  %v206_v25 = vld [vmem:[%s191_s8 + $0x38] sm:$0x7] }
  0x1c   : > { %248 = vst [vmem:[%s550_s9] sm:$0xff] %v244_v20  ;;  %249 = vst [vmem:[%s550_s9 + $0x8] sm:$0xff] %v221_v21  ;;  %v224_v26 = vsel %vm218_vm1, %v222_v12, %v223_v16  ;;  %v246_v27 = vsel %vm218_vm1, %v242_v15, %v225_v17  ;;  %v228_v28 = vrot.slane %v205_v24, 3  ;;  %v243_v29 = vsel %vm239_vm0, %v198_v19, %v208_v1  ;;  %p411_p3 = pnand %p410_p2, %p404_p13 }
  0x1d   : > { %250 = vst [vmem:[%s550_s9 + $0x10] sm:$0xff] %v245_v22  ;;  %251 = vst [vmem:[%s550_s9 + $0x18] sm:$0xff] %v224_v26  ;;  %v227_v30 = vsel %vm218_vm1, %v225_v17, %v226_v23  ;;  %v229_v31 = vrot.slane %v206_v25, 3 }
  0x1e   : > { %252 = vst [vmem:[%s550_s9 + $0x20] sm:$0xff] %v246_v27  ;;  %253 = vst [vmem:[%s550_s9 + $0x28] sm:$0xff] %v227_v30  ;;  %v247_v32 = vsel %vm218_vm1, %v243_v29, %v228_v28 }
  0x1f   : > { %254 = vst [vmem:[%s550_s9 + $0x30] sm:$0xff] %v247_v32  ;;  %v230_v33 = vsel %vm218_vm1, %v228_v28, %v229_v31 }
  0x20   : > { %255 = vst [vmem:[%s550_s9 + $0x38] sm:$0xff] %v230_v33 }
  0x21   : > { %414 = shalt.err (!%p411_p3)
}
  0x22   : > { %s415_s24 = scalar_lea.hbm %s575_s20, 1024  ;;  %s419_s4 = scalar_lea.hbm %s628_s3, 2048 }
  0x23   : > { %p416_p4 = scmp.ne.s32.totalorder %s575_s20, %s415_s24  ;;  %p420_p9 = scmp.lt.u32.totalorder %s575_s20, %s628_s3 }
  0x24   : > { %p421_p10 = scmp.lt.u32.totalorder %s419_s4, %s415_s24  ;;  %p423_p12 = scmp.lt.u32.totalorder %s415_s24, %s575_s20 }
  0x25   : > { %p417_p7 = pnand %p416_p4, %p526_p5 }
  0x26   : > { %p422_p11 = por %p421_p10, %p420_p9 }
  0x27   : > { %p418_p8 = pneg %p417_p7 }
  0x28   : > { %p424_p13 = por %p423_p12, %p422_p11 }
  0x2a   : > { %p425_p0 = pnand %p424_p13, %p418_p8 }
  0x2c   : > { %428 = shalt.err (!%p425_p0)
}
  0x2d   : > { %s466_s7 = smov 128   ;;  %s467_s8 = smov 8  }
  0x2e   : > { %360 = dma.vmem_to_hbm [thread:$0]  (%p526_p5), %s565_s10, 1024, %s575_s20, %s584_s25, %s466_s7, %s466_s7, %s467_s8  }
  0x2f PF: > { %p366_p1 = scmp.ge.s32.totalorder %s463_s15, 2  ;;  %s286_s9 = sand.u32 1, %s451_s12  }
  0x30   : > { %s287_s11 = scalar_lea.sflag [#allocation3], %s286_s9 }
  0x31   : > { %p363_p2 = pnand %p366_p1, %p530_p6 }
  0x33   : > { %446 = dma.done.wait (!%p363_p2), %s287_s11, 1024  }
  0x34   : > { %448 = vsyncadd (!%p363_p2), %s287_s11, 4294966272  ;;  %p13_p3 = scmp.ge.s32.totalorder %s513_s18, 4   ;;  %s631_s12 = smov %s455_s13 }
  0x35   : > { %s632_s13 = smov %s459_s14  ;;  %s633_s14 = smov %s524_s21 }
  0x36   : > { %s634_s15 = smov %s513_s18  ;;  %15 = sbr.rel (!%p13_p3) target bundleno = 3 (0x3), region = 70 }
  0x3d   :  { %292 = vsyncpa [#allocation3], 1 }
  0x3e   :  { %294 = vsyncpa [#allocation3 + $0x1], 1 }

</bundles_post_ra>
